<compile_context>
chip_gen: v5e
topology: v5e:2x2
jax: 0.10.0
libtpu: 0.0.40
codegen_flags: <defaults>
</compile_context>

<pallas_src>
import functools

import jax
import jax.numpy as jnp
from jax.experimental import pallas as pl
from jax.experimental.pallas import tpu as pltpu


_LANES = 128
_TILE_BYTES = 12 * 1024 * 1024      # per input buffer (x2 for double buffering)
_VMEM_LIMIT = 48 * 1024 * 1024      # fits v7x (64 MiB phys) and v5e/v6e (128 MiB)

# Flip to True only after verifying (Mosaic dump) that CORE_PARALLEL shards the
# leading axis across both v7x TensorCores on your toolchain.  PARALLEL is the
# safe default and matches the previously validated build.
_V7X_CORE_PARALLEL = False


def _num_tensorcores():
    """Best-effort TensorCores-per-addressable-device for the current backend."""
    # TODO(synk): replace the device_kind parse with a pltpu.get_tpu_info()
    # core count once that field is exposed on the target jax version.
    try:
        kind = jax.devices()[0].device_kind.lower()
    except Exception:
        return 1
    if "lite" in kind or "v5e" in kind or "v6" in kind:
        return 1                                  # single TensorCore per device
    if any(tag in kind for tag in ("v7", "v4", "v5p")):
        return 2                                  # v7x: 2 TCs; v4/v5p: megacore
    return 1


def _lead_axis_semantics(ncores_eff):
    if ncores_eff <= 1:
        return pltpu.ARBITRARY
    try:
        kind = jax.devices()[0].device_kind.lower()
    except Exception:
        kind = ""
    if _V7X_CORE_PARALLEL and "v7" in kind:
        return pltpu.CORE_PARALLEL
    return pltpu.PARALLEL


def _seg_reduce(x, lane, seg, op):
    """Reduction along the lane axis, segmented into `seg`-wide aligned blocks.

    x    : (R, L) float32.  When seg == L this is a plain keepdims reduce.
    lane : (R, L) int32 lane iota (hoisted by the caller, reused across calls).
    seg  : segment width; guaranteed a power of two dividing L when seg < L.

    For seg < L an XOR-butterfly is used: after steps s = 1, 2, ..., seg/2 every
    lane holds the reduction of its aligned seg-wide segment (and the result is
    already broadcast across the segment, so no separate broadcast is needed).
    """
    n = x.shape[-1]
    if seg == n:
        if op == "max":
            return jnp.max(x, axis=-1, keepdims=True)
        return jnp.sum(x, axis=-1, keepdims=True)
    combine = jnp.maximum if op == "max" else jnp.add
    y = x
    s = 1
    while s < seg:
        fwd = pltpu.roll(y, n - s, 1)             # lane i <- y[i + s]
        bwd = pltpu.roll(y, s, 1)                 # lane i <- y[i - s]
        partner = jnp.where((lane & s) != 0, bwd, fwd)   # y[i ^ s]
        y = combine(y, partner)
        s *= 2
    return y


def _im_loss_partial_kernel(y_ref, ent_ref, psum_ref, *,
                            tb, rows, tiles_per_core, seg, fast_entropy):
    """Accumulate per-core partial sums.

    y_ref    : (TB, C_eff) logits tile (VMEM); C_eff = 128 when lane-folded.
    ent_ref  : (1, 1, 1)      running  sum_rows sum_c -p*log(p+eps)
    psum_ref : (1, 1, C_eff)  running  sum_rows p
    Both outputs use an index_map constant along the tile axis, so they stay
    resident in VMEM for the whole per-core reduction.
    """
    core = pl.program_id(0)
    tile = pl.program_id(1)

    @pl.when(tile == 0)
    def _init():
        ent_ref[...] = jnp.zeros_like(ent_ref)
        psum_ref[...] = jnp.zeros_like(psum_ref)

    row_start = (core * tiles_per_core + tile) * tb

    def accumulate(masked):
        x = y_ref[...].astype(jnp.float32)                     # (TB, C_eff)
        c_eff = x.shape[-1]
        lane = None
        if seg != c_eff:
            # Hoist the lane iota once; reused by both segmented reductions.
            lane = jax.lax.broadcasted_iota(jnp.int32, (tb, c_eff), 1)

        # Numerically stable (segmented) softmax along the lane axis.
        m = _seg_reduce(x, lane, seg, "max")
        e = jnp.exp(x - m)
        denom = _seg_reduce(e, lane, seg, "sum")                # >= 1 per segment
        p = e * pl.reciprocal(denom, approx=False)

        if fast_entropy:
            # log-softmax identity; drops the reference's +1e-5 (opt-in only).
            ent_el = -p * ((x - m) - jnp.log(denom))
        else:
            # Exact reference entropy term.
            ent_el = -p * jnp.log(p + 1e-5)
        ent_rows = jnp.sum(ent_el, axis=-1, keepdims=True)      # (TB, 1)

        if masked:
            r = jax.lax.broadcasted_iota(jnp.int32, (tb, 1), 0) + row_start
            valid = r < rows                                    # (TB, 1)
            # Select-based masking: garbage/NaN in padded rows cannot leak.
            ent_rows = jnp.where(valid, ent_rows, 0.0)
            p = jnp.where(valid, p, 0.0)

        ent_ref[...] += jnp.sum(ent_rows, axis=0, keepdims=True).reshape(1, 1, 1)
        psum_ref[...] += jnp.sum(p, axis=0, keepdims=True).reshape(1, 1, c_eff)

    full = row_start + tb <= rows

    @pl.when(full)
    def _interior():                     # no masking work on interior tiles
        accumulate(masked=False)

    @pl.when(jnp.logical_and(jnp.logical_not(full), row_start < rows))
    def _edge():                         # the single partial tile per core
        accumulate(masked=True)
    # Fully over-covered (clamped) tiles fall through: only their DMA is paid.


def _pick_tile_rows(rows, c_eff, itemsize, ncores):
    """Largest sensible row tile: multiple of 16, ~_TILE_BYTES per buffer."""
    per_core = pl.cdiv(rows, ncores)
    per_core = pl.cdiv(per_core, 16) * 16
    budget = max(16, (_TILE_BYTES // (itemsize * c_eff)) // 16 * 16)
    tb = min(budget, per_core)
    return rows if tb >= rows else tb


def im_loss_shot(y_pred, *, tile_rows=None, fast_entropy=False, fold_lanes=True):
    """IM loss (SHOT).  y_pred: (B, C) logits (f32 or bf16).  Returns f32 scalar."""
    assert y_pred.ndim == 2, "y_pred must be (batch, classes)"
    batch, num_classes = y_pred.shape

    # Lane folding for small class counts: free reshape (B, C) -> (B//k, k*C=128).
    fold = 1
    if (fold_lanes and num_classes < _LANES and _LANES % num_classes == 0
            and batch % (_LANES // num_classes) == 0):
        fold = _LANES // num_classes
    rows = batch // fold
    c_eff = num_classes * fold
    x = y_pred.reshape(rows, c_eff) if fold > 1 else y_pred

    ncores = _num_tensorcores()
    itemsize = jnp.dtype(x.dtype).itemsize
    tb = (_pick_tile_rows(rows, c_eff, itemsize, ncores)
          if tile_rows is None else int(tile_rows))
    assert tb > 0 and (tb == rows or tb % 16 == 0), \
        "tile_rows must be a multiple of 16 (bf16 packing) or the full row count"

    num_tiles = pl.cdiv(rows, tb)
    ncores_eff = max(1, min(ncores, num_tiles))     # 1-D-equivalent grid on 1-TC chips
    tiles_per_core = pl.cdiv(num_tiles, ncores_eff)

    def in_map(i, j):
        # Clamp so the DMA never walks past the last row block; over-covered
        # tiles are skipped entirely inside the kernel (pl.when gate).
        return (jnp.minimum(i * tiles_per_core + j, num_tiles - 1), 0)

    ent_part, psum_part = pl.pallas_call(
        functools.partial(
            _im_loss_partial_kernel,
            tb=tb, rows=rows, tiles_per_core=tiles_per_core,
            seg=num_classes, fast_entropy=fast_entropy,
        ),
        grid=(ncores_eff, tiles_per_core),
        in_specs=[pl.BlockSpec((tb, c_eff), in_map)],
        out_specs=(
            pl.BlockSpec((1, 1, 1), lambda i, j: (i, 0, 0)),
            pl.BlockSpec((1, 1, c_eff), lambda i, j: (i, 0, 0)),
        ),
        out_shape=(
            jax.ShapeDtypeStruct((ncores_eff, 1, 1), jnp.float32),
            jax.ShapeDtypeStruct((ncores_eff, 1, c_eff), jnp.float32),
        ),
        compiler_params=pltpu.CompilerParams(
            dimension_semantics=(_lead_axis_semantics(ncores_eff), pltpu.ARBITRARY),
            vmem_limit_bytes=_VMEM_LIMIT,
        ),
    )(x)

    # Tiny O(C) finalize in plain JAX (fuses into the surrounding graph).
    l_ent = jnp.sum(ent_part) / batch
    msoft = (jnp.sum(psum_part, axis=(0, 1))
             .reshape(fold, num_classes).sum(axis=0) / batch)
    l_div = jnp.sum(-msoft * jnp.log(msoft + 1e-6))
    return l_ent - l_div


def _im_loss_ref(y_pred):
    # Pure-JAX reference matching the PyTorch module exactly.
    p = jax.nn.softmax(y_pred.astype(jnp.float32), axis=-1)
    l_ent = jnp.mean(jnp.sum(-p * jnp.log(p + 1e-5), axis=-1))
    msoft = jnp.mean(p, axis=0)
    l_div = jnp.sum(-msoft * jnp.log(msoft + 1e-6))
    return l_ent - l_div


if __name__ == "__main__":
    key = jax.random.PRNGKey(0)
    k0, k1, k2, k3 = jax.random.split(key, 4)

    # 1) Primary small smoke test (lane-folded path: C=32 -> fold 4, c_eff=128).
    y0 = jax.random.normal(k0, (8, 32), dtype=jnp.float32)
    loss0 = jax.block_until_ready(im_loss_shot(y0))
    ref0 = _im_loss_ref(y0)
    assert jnp.allclose(loss0, ref0, atol=1e-4, rtol=1e-4), (loss0, ref0)

    # 2) Folded path with remainder rows + interior/edge pl.when branches.
    y1 = jax.random.normal(k1, (200, 32), dtype=jnp.float32) * 2.0
    loss1 = jax.block_until_ready(im_loss_shot(y1, tile_rows=16))
    ref1 = _im_loss_ref(y1)
    assert jnp.allclose(loss1, ref1, atol=1e-4, rtol=1e-4), (loss1, ref1)

    # 3) Unfolded path (C=96 does not divide 128) with a partial last tile.
    y2 = jax.random.normal(k2, (100, 96), dtype=jnp.float32) * 3.0
    loss2 = jax.block_until_ready(im_loss_shot(y2, tile_rows=16))
    ref2 = _im_loss_ref(y2)
    assert jnp.allclose(loss2, ref2, atol=1e-4, rtol=1e-4), (loss2, ref2)

    # 4) bf16 logits, no wrapper upcast (folded: C=64 -> fold 2).
    y3 = jax.random.normal(k3, (128, 64), dtype=jnp.float32).astype(jnp.bfloat16)
    loss3 = jax.block_until_ready(im_loss_shot(y3))
    ref3 = _im_loss_ref(y3)
    assert jnp.allclose(loss3, ref3, atol=1e-4, rtol=1e-4), (loss3, ref3)

    # 5) Opt-in fast entropy (log-softmax identity; deviates by <= ~C*1e-5).
    loss_fast = jax.block_until_ready(im_loss_shot(y1, tile_rows=16,
                                                   fast_entropy=True))
    assert jnp.allclose(loss_fast, ref1, atol=1e-3, rtol=1e-3), (loss_fast, ref1)

    print("KERNEL_OK")
</pallas_src>

<mosaic_0001>
module attributes {stable_mosaic.version = 11 : i64} {
  func.func @_im_loss_partial_kernel(%arg0: i32, %arg1: i32, %arg2: memref<2x128xf32, #tpu.memory_space<vmem>>, %arg3: memref<1x1x1xf32, #tpu.memory_space<vmem>>, %arg4: memref<1x1x128xf32, #tpu.memory_space<vmem>>) attributes {dimension_semantics = [#tpu.dimension_semantics<arbitrary>, #tpu.dimension_semantics<arbitrary>], iteration_bounds = array<i64: 1, 1>, scalar_prefetch = 0 : i64, scratch_operands = 0 : i64, tpu.core_type = #tpu.core_type<tc>, window_params = [{transform_indices = @transform_0, window_bounds = array<i64: 2, 128>}, {transform_indices = @transform_1, window_bounds = array<i64: 1, 1, 1>}, {transform_indices = @transform_2, window_bounds = array<i64: 1, 1, 128>}]} {
    %c0_i32 = arith.constant 0 : i32
    %0 = arith.cmpi eq, %arg1, %c0_i32 : i32
    %1 = arith.extui %0 : i1 to i32
    %c0_i32_0 = arith.constant 0 : i32
    %2 = arith.cmpi ne, %1, %c0_i32_0 : i32
    scf.if %2 {
      %cst = arith.constant 0.000000e+00 : f32
      %15 = vector.broadcast %cst : f32 to vector<1x1x1xf32>
      %c0 = arith.constant 0 : index
      %c0_6 = arith.constant 0 : index
      %c0_7 = arith.constant 0 : index
      %16 = vector.load %arg3[%c0, %c0_6, %c0_7] : memref<1x1x1xf32, #tpu.memory_space<vmem>>, vector<1x1x1xf32>
      tpu.vector_store %arg3[%c0, %c0_6, %c0_7], %15 {strides = array<i32>} : memref<1x1x1xf32, #tpu.memory_space<vmem>>, vector<1x1x1xf32>,
      %cst_8 = arith.constant 0.000000e+00 : f32
      %17 = vector.broadcast %cst_8 : f32 to vector<1x1x128xf32>
      %c0_9 = arith.constant 0 : index
      %c0_10 = arith.constant 0 : index
      %c0_11 = arith.constant 0 : index
      %18 = vector.load %arg4[%c0_9, %c0_10, %c0_11] : memref<1x1x128xf32, #tpu.memory_space<vmem>>, vector<1x1x128xf32>
      tpu.vector_store %arg4[%c0_9, %c0_10, %c0_11], %17 {strides = array<i32>} : memref<1x1x128xf32, #tpu.memory_space<vmem>>, vector<1x1x128xf32>,
    } else {
    }
    %c1_i32 = arith.constant 1 : i32
    %3 = arith.muli %arg0, %c1_i32 : i32
    %4 = arith.addi %3, %arg1 : i32
    %c2_i32 = arith.constant 2 : i32
    %5 = arith.muli %4, %c2_i32 : i32
    %c2_i32_1 = arith.constant 2 : i32
    %6 = arith.addi %5, %c2_i32_1 : i32
    %c2_i32_2 = arith.constant 2 : i32
    %7 = arith.cmpi sle, %6, %c2_i32_2 : i32
    %8 = arith.extui %7 : i1 to i32
    %c0_i32_3 = arith.constant 0 : i32
    %9 = arith.cmpi ne, %8, %c0_i32_3 : i32
    scf.if %9 {
      %c0 = arith.constant 0 : index
      %c0_6 = arith.constant 0 : index
      %15 = vector.load %arg2[%c0, %c0_6] : memref<2x128xf32, #tpu.memory_space<vmem>>, vector<2x128xf32>
      %16 = tpu.iota {dimensions = array<i32: 1>} : vector<2x128xi32>
      %c127_i32 = arith.constant 127 : i32
      %17 = tpu.dynamic_rotate %15 by %c127_i32 dim 1 : vector<2x128xf32>, i32 -> vector<2x128xf32>
      %c1_i32_7 = arith.constant 1 : i32
      %18 = tpu.dynamic_rotate %15 by %c1_i32_7 dim 1 : vector<2x128xf32>, i32 -> vector<2x128xf32>
      %c1_i32_8 = arith.constant 1 : i32
      %19 = vector.broadcast %c1_i32_8 : i32 to vector<2x128xi32>
      %20 = arith.andi %16, %19 : vector<2x128xi32>
      %c0_i32_9 = arith.constant 0 : i32
      %21 = vector.broadcast %c0_i32_9 : i32 to vector<2x128xi32>
      %22 = arith.cmpi ne, %20, %21 : vector<2x128xi32>
      %23 = arith.select %22, %18, %17 : vector<2x128xi1>, vector<2x128xf32>
      %24 = arith.maximumf %15, %23 : vector<2x128xf32>
      %c126_i32 = arith.constant 126 : i32
      %25 = tpu.dynamic_rotate %24 by %c126_i32 dim 1 : vector<2x128xf32>, i32 -> vector<2x128xf32>
      %c2_i32_10 = arith.constant 2 : i32
      %26 = tpu.dynamic_rotate %24 by %c2_i32_10 dim 1 : vector<2x128xf32>, i32 -> vector<2x128xf32>
      %c2_i32_11 = arith.constant 2 : i32
      %27 = vector.broadcast %c2_i32_11 : i32 to vector<2x128xi32>
      %28 = arith.andi %16, %27 : vector<2x128xi32>
      %c0_i32_12 = arith.constant 0 : i32
      %29 = vector.broadcast %c0_i32_12 : i32 to vector<2x128xi32>
      %30 = arith.cmpi ne, %28, %29 : vector<2x128xi32>
      %31 = arith.select %30, %26, %25 : vector<2x128xi1>, vector<2x128xf32>
      %32 = arith.maximumf %24, %31 : vector<2x128xf32>
      %c124_i32 = arith.constant 124 : i32
      %33 = tpu.dynamic_rotate %32 by %c124_i32 dim 1 : vector<2x128xf32>, i32 -> vector<2x128xf32>
      %c4_i32 = arith.constant 4 : i32
      %34 = tpu.dynamic_rotate %32 by %c4_i32 dim 1 : vector<2x128xf32>, i32 -> vector<2x128xf32>
      %c4_i32_13 = arith.constant 4 : i32
      %35 = vector.broadcast %c4_i32_13 : i32 to vector<2x128xi32>
      %36 = arith.andi %16, %35 : vector<2x128xi32>
      %c0_i32_14 = arith.constant 0 : i32
      %37 = vector.broadcast %c0_i32_14 : i32 to vector<2x128xi32>
      %38 = arith.cmpi ne, %36, %37 : vector<2x128xi32>
      %39 = arith.select %38, %34, %33 : vector<2x128xi1>, vector<2x128xf32>
      %40 = arith.maximumf %32, %39 : vector<2x128xf32>
      %c120_i32 = arith.constant 120 : i32
      %41 = tpu.dynamic_rotate %40 by %c120_i32 dim 1 : vector<2x128xf32>, i32 -> vector<2x128xf32>
      %c8_i32 = arith.constant 8 : i32
      %42 = tpu.dynamic_rotate %40 by %c8_i32 dim 1 : vector<2x128xf32>, i32 -> vector<2x128xf32>
      %c8_i32_15 = arith.constant 8 : i32
      %43 = vector.broadcast %c8_i32_15 : i32 to vector<2x128xi32>
      %44 = arith.andi %16, %43 : vector<2x128xi32>
      %c0_i32_16 = arith.constant 0 : i32
      %45 = vector.broadcast %c0_i32_16 : i32 to vector<2x128xi32>
      %46 = arith.cmpi ne, %44, %45 : vector<2x128xi32>
      %47 = arith.select %46, %42, %41 : vector<2x128xi1>, vector<2x128xf32>
      %48 = arith.maximumf %40, %47 : vector<2x128xf32>
      %c112_i32 = arith.constant 112 : i32
      %49 = tpu.dynamic_rotate %48 by %c112_i32 dim 1 : vector<2x128xf32>, i32 -> vector<2x128xf32>
      %c16_i32 = arith.constant 16 : i32
      %50 = tpu.dynamic_rotate %48 by %c16_i32 dim 1 : vector<2x128xf32>, i32 -> vector<2x128xf32>
      %c16_i32_17 = arith.constant 16 : i32
      %51 = vector.broadcast %c16_i32_17 : i32 to vector<2x128xi32>
      %52 = arith.andi %16, %51 : vector<2x128xi32>
      %c0_i32_18 = arith.constant 0 : i32
      %53 = vector.broadcast %c0_i32_18 : i32 to vector<2x128xi32>
      %54 = arith.cmpi ne, %52, %53 : vector<2x128xi32>
      %55 = arith.select %54, %50, %49 : vector<2x128xi1>, vector<2x128xf32>
      %56 = arith.maximumf %48, %55 : vector<2x128xf32>
      %57 = arith.subf %15, %56 : vector<2x128xf32>
      %58 = math.exp %57 : vector<2x128xf32>
      %c127_i32_19 = arith.constant 127 : i32
      %59 = tpu.dynamic_rotate %58 by %c127_i32_19 dim 1 : vector<2x128xf32>, i32 -> vector<2x128xf32>
      %c1_i32_20 = arith.constant 1 : i32
      %60 = tpu.dynamic_rotate %58 by %c1_i32_20 dim 1 : vector<2x128xf32>, i32 -> vector<2x128xf32>
      %c1_i32_21 = arith.constant 1 : i32
      %61 = vector.broadcast %c1_i32_21 : i32 to vector<2x128xi32>
      %62 = arith.andi %16, %61 : vector<2x128xi32>
      %c0_i32_22 = arith.constant 0 : i32
      %63 = vector.broadcast %c0_i32_22 : i32 to vector<2x128xi32>
      %64 = arith.cmpi ne, %62, %63 : vector<2x128xi32>
      %65 = arith.select %64, %60, %59 : vector<2x128xi1>, vector<2x128xf32>
      %66 = arith.addf %58, %65 : vector<2x128xf32>
      %c126_i32_23 = arith.constant 126 : i32
      %67 = tpu.dynamic_rotate %66 by %c126_i32_23 dim 1 : vector<2x128xf32>, i32 -> vector<2x128xf32>
      %c2_i32_24 = arith.constant 2 : i32
      %68 = tpu.dynamic_rotate %66 by %c2_i32_24 dim 1 : vector<2x128xf32>, i32 -> vector<2x128xf32>
      %c2_i32_25 = arith.constant 2 : i32
      %69 = vector.broadcast %c2_i32_25 : i32 to vector<2x128xi32>
      %70 = arith.andi %16, %69 : vector<2x128xi32>
      %c0_i32_26 = arith.constant 0 : i32
      %71 = vector.broadcast %c0_i32_26 : i32 to vector<2x128xi32>
      %72 = arith.cmpi ne, %70, %71 : vector<2x128xi32>
      %73 = arith.select %72, %68, %67 : vector<2x128xi1>, vector<2x128xf32>
      %74 = arith.addf %66, %73 : vector<2x128xf32>
      %c124_i32_27 = arith.constant 124 : i32
      %75 = tpu.dynamic_rotate %74 by %c124_i32_27 dim 1 : vector<2x128xf32>, i32 -> vector<2x128xf32>
      %c4_i32_28 = arith.constant 4 : i32
      %76 = tpu.dynamic_rotate %74 by %c4_i32_28 dim 1 : vector<2x128xf32>, i32 -> vector<2x128xf32>
      %c4_i32_29 = arith.constant 4 : i32
      %77 = vector.broadcast %c4_i32_29 : i32 to vector<2x128xi32>
      %78 = arith.andi %16, %77 : vector<2x128xi32>
      %c0_i32_30 = arith.constant 0 : i32
      %79 = vector.broadcast %c0_i32_30 : i32 to vector<2x128xi32>
      %80 = arith.cmpi ne, %78, %79 : vector<2x128xi32>
      %81 = arith.select %80, %76, %75 : vector<2x128xi1>, vector<2x128xf32>
      %82 = arith.addf %74, %81 : vector<2x128xf32>
      %c120_i32_31 = arith.constant 120 : i32
      %83 = tpu.dynamic_rotate %82 by %c120_i32_31 dim 1 : vector<2x128xf32>, i32 -> vector<2x128xf32>
      %c8_i32_32 = arith.constant 8 : i32
      %84 = tpu.dynamic_rotate %82 by %c8_i32_32 dim 1 : vector<2x128xf32>, i32 -> vector<2x128xf32>
      %c8_i32_33 = arith.constant 8 : i32
      %85 = vector.broadcast %c8_i32_33 : i32 to vector<2x128xi32>
      %86 = arith.andi %16, %85 : vector<2x128xi32>
      %c0_i32_34 = arith.constant 0 : i32
      %87 = vector.broadcast %c0_i32_34 : i32 to vector<2x128xi32>
      %88 = arith.cmpi ne, %86, %87 : vector<2x128xi32>
      %89 = arith.select %88, %84, %83 : vector<2x128xi1>, vector<2x128xf32>
      %90 = arith.addf %82, %89 : vector<2x128xf32>
      %c112_i32_35 = arith.constant 112 : i32
      %91 = tpu.dynamic_rotate %90 by %c112_i32_35 dim 1 : vector<2x128xf32>, i32 -> vector<2x128xf32>
      %c16_i32_36 = arith.constant 16 : i32
      %92 = tpu.dynamic_rotate %90 by %c16_i32_36 dim 1 : vector<2x128xf32>, i32 -> vector<2x128xf32>
      %c16_i32_37 = arith.constant 16 : i32
      %93 = vector.broadcast %c16_i32_37 : i32 to vector<2x128xi32>
      %94 = arith.andi %16, %93 : vector<2x128xi32>
      %c0_i32_38 = arith.constant 0 : i32
      %95 = vector.broadcast %c0_i32_38 : i32 to vector<2x128xi32>
      %96 = arith.cmpi ne, %94, %95 : vector<2x128xi32>
      %97 = arith.select %96, %92, %91 : vector<2x128xi1>, vector<2x128xf32>
      %98 = arith.addf %90, %97 : vector<2x128xf32>
      %99 = tpu.reciprocal %98 : vector<2x128xf32> -> vector<2x128xf32>
      %100 = arith.mulf %58, %99 : vector<2x128xf32>
      %cst = arith.constant 0.000000e+00 : f32
      %101 = vector.broadcast %cst : f32 to vector<2x128xf32>
      %102 = arith.subf %101, %100 : vector<2x128xf32>
      %cst_39 = arith.constant 9.99999974E-6 : f32
      %103 = vector.broadcast %cst_39 : f32 to vector<2x128xf32>
      %104 = arith.addf %100, %103 : vector<2x128xf32>
      %105 = math.log %104 : vector<2x128xf32>
      %106 = arith.mulf %102, %105 : vector<2x128xf32>
      %cst_40 = arith.constant dense<0.000000e+00> : vector<2xf32>
      %107 = vector.multi_reduction <add>, %106, %cst_40 [1] : vector<2x128xf32> to vector<2xf32>
      %108 = vector.shape_cast %107 : vector<2xf32> to vector<2x1xf32>
      %c0_41 = arith.constant 0 : index
      %c0_42 = arith.constant 0 : index
      %c0_43 = arith.constant 0 : index
      %109 = vector.load %arg3[%c0_41, %c0_42, %c0_43] : memref<1x1x1xf32, #tpu.memory_space<vmem>>, vector<1x1x1xf32>
      %cst_44 = arith.constant dense<0.000000e+00> : vector<1xf32>
      %110 = vector.multi_reduction <add>, %108, %cst_44 [0] : vector<2x1xf32> to vector<1xf32>
      %111 = vector.shape_cast %110 : vector<1xf32> to vector<1x1xf32>
      %112 = vector.shape_cast %111 : vector<1x1xf32> to vector<1x1x1xf32>
      %113 = arith.addf %109, %112 : vector<1x1x1xf32>
      %c0_45 = arith.constant 0 : index
      %c0_46 = arith.constant 0 : index
      %c0_47 = arith.constant 0 : index
      %114 = vector.load %arg3[%c0_45, %c0_46, %c0_47] : memref<1x1x1xf32, #tpu.memory_space<vmem>>, vector<1x1x1xf32>
      tpu.vector_store %arg3[%c0_45, %c0_46, %c0_47], %113 {strides = array<i32>} : memref<1x1x1xf32, #tpu.memory_space<vmem>>, vector<1x1x1xf32>,
      %c0_48 = arith.constant 0 : index
      %c0_49 = arith.constant 0 : index
      %c0_50 = arith.constant 0 : index
      %115 = vector.load %arg4[%c0_48, %c0_49, %c0_50] : memref<1x1x128xf32, #tpu.memory_space<vmem>>, vector<1x1x128xf32>
      %cst_51 = arith.constant dense<0.000000e+00> : vector<128xf32>
      %116 = vector.multi_reduction <add>, %100, %cst_51 [0] : vector<2x128xf32> to vector<128xf32>
      %117 = vector.shape_cast %116 : vector<128xf32> to vector<1x128xf32>
      %118 = vector.shape_cast %117 : vector<1x128xf32> to vector<1x1x128xf32>
      %119 = arith.addf %115, %118 : vector<1x1x128xf32>
      %c0_52 = arith.constant 0 : index
      %c0_53 = arith.constant 0 : index
      %c0_54 = arith.constant 0 : index
      %120 = vector.load %arg4[%c0_52, %c0_53, %c0_54] : memref<1x1x128xf32, #tpu.memory_space<vmem>>, vector<1x1x128xf32>
      tpu.vector_store %arg4[%c0_52, %c0_53, %c0_54], %119 {strides = array<i32>} : memref<1x1x128xf32, #tpu.memory_space<vmem>>, vector<1x1x128xf32>,
    } else {
    }
    %true = arith.constant true
    %10 = arith.xori %7, %true : i1
    %c2_i32_4 = arith.constant 2 : i32
    %11 = arith.cmpi slt, %5, %c2_i32_4 : i32
    %12 = arith.andi %10, %11 : i1
    %13 = arith.extui %12 : i1 to i32
    %c0_i32_5 = arith.constant 0 : i32
    %14 = arith.cmpi ne, %13, %c0_i32_5 : i32
    scf.if %14 {
      %c0 = arith.constant 0 : index
      %c0_6 = arith.constant 0 : index
      %15 = vector.load %arg2[%c0, %c0_6] : memref<2x128xf32, #tpu.memory_space<vmem>>, vector<2x128xf32>
      %16 = tpu.iota {dimensions = array<i32: 1>} : vector<2x128xi32>
      %c127_i32 = arith.constant 127 : i32
      %17 = tpu.dynamic_rotate %15 by %c127_i32 dim 1 : vector<2x128xf32>, i32 -> vector<2x128xf32>
      %c1_i32_7 = arith.constant 1 : i32
      %18 = tpu.dynamic_rotate %15 by %c1_i32_7 dim 1 : vector<2x128xf32>, i32 -> vector<2x128xf32>
      %c1_i32_8 = arith.constant 1 : i32
      %19 = vector.broadcast %c1_i32_8 : i32 to vector<2x128xi32>
      %20 = arith.andi %16, %19 : vector<2x128xi32>
      %c0_i32_9 = arith.constant 0 : i32
      %21 = vector.broadcast %c0_i32_9 : i32 to vector<2x128xi32>
      %22 = arith.cmpi ne, %20, %21 : vector<2x128xi32>
      %23 = arith.select %22, %18, %17 : vector<2x128xi1>, vector<2x128xf32>
      %24 = arith.maximumf %15, %23 : vector<2x128xf32>
      %c126_i32 = arith.constant 126 : i32
      %25 = tpu.dynamic_rotate %24 by %c126_i32 dim 1 : vector<2x128xf32>, i32 -> vector<2x128xf32>
      %c2_i32_10 = arith.constant 2 : i32
      %26 = tpu.dynamic_rotate %24 by %c2_i32_10 dim 1 : vector<2x128xf32>, i32 -> vector<2x128xf32>
      %c2_i32_11 = arith.constant 2 : i32
      %27 = vector.broadcast %c2_i32_11 : i32 to vector<2x128xi32>
      %28 = arith.andi %16, %27 : vector<2x128xi32>
      %c0_i32_12 = arith.constant 0 : i32
      %29 = vector.broadcast %c0_i32_12 : i32 to vector<2x128xi32>
      %30 = arith.cmpi ne, %28, %29 : vector<2x128xi32>
      %31 = arith.select %30, %26, %25 : vector<2x128xi1>, vector<2x128xf32>
      %32 = arith.maximumf %24, %31 : vector<2x128xf32>
      %c124_i32 = arith.constant 124 : i32
      %33 = tpu.dynamic_rotate %32 by %c124_i32 dim 1 : vector<2x128xf32>, i32 -> vector<2x128xf32>
      %c4_i32 = arith.constant 4 : i32
      %34 = tpu.dynamic_rotate %32 by %c4_i32 dim 1 : vector<2x128xf32>, i32 -> vector<2x128xf32>
      %c4_i32_13 = arith.constant 4 : i32
      %35 = vector.broadcast %c4_i32_13 : i32 to vector<2x128xi32>
      %36 = arith.andi %16, %35 : vector<2x128xi32>
      %c0_i32_14 = arith.constant 0 : i32
      %37 = vector.broadcast %c0_i32_14 : i32 to vector<2x128xi32>
      %38 = arith.cmpi ne, %36, %37 : vector<2x128xi32>
      %39 = arith.select %38, %34, %33 : vector<2x128xi1>, vector<2x128xf32>
      %40 = arith.maximumf %32, %39 : vector<2x128xf32>
      %c120_i32 = arith.constant 120 : i32
      %41 = tpu.dynamic_rotate %40 by %c120_i32 dim 1 : vector<2x128xf32>, i32 -> vector<2x128xf32>
      %c8_i32 = arith.constant 8 : i32
      %42 = tpu.dynamic_rotate %40 by %c8_i32 dim 1 : vector<2x128xf32>, i32 -> vector<2x128xf32>
      %c8_i32_15 = arith.constant 8 : i32
      %43 = vector.broadcast %c8_i32_15 : i32 to vector<2x128xi32>
      %44 = arith.andi %16, %43 : vector<2x128xi32>
      %c0_i32_16 = arith.constant 0 : i32
      %45 = vector.broadcast %c0_i32_16 : i32 to vector<2x128xi32>
      %46 = arith.cmpi ne, %44, %45 : vector<2x128xi32>
      %47 = arith.select %46, %42, %41 : vector<2x128xi1>, vector<2x128xf32>
      %48 = arith.maximumf %40, %47 : vector<2x128xf32>
      %c112_i32 = arith.constant 112 : i32
      %49 = tpu.dynamic_rotate %48 by %c112_i32 dim 1 : vector<2x128xf32>, i32 -> vector<2x128xf32>
      %c16_i32 = arith.constant 16 : i32
      %50 = tpu.dynamic_rotate %48 by %c16_i32 dim 1 : vector<2x128xf32>, i32 -> vector<2x128xf32>
      %c16_i32_17 = arith.constant 16 : i32
      %51 = vector.broadcast %c16_i32_17 : i32 to vector<2x128xi32>
      %52 = arith.andi %16, %51 : vector<2x128xi32>
      %c0_i32_18 = arith.constant 0 : i32
      %53 = vector.broadcast %c0_i32_18 : i32 to vector<2x128xi32>
      %54 = arith.cmpi ne, %52, %53 : vector<2x128xi32>
      %55 = arith.select %54, %50, %49 : vector<2x128xi1>, vector<2x128xf32>
      %56 = arith.maximumf %48, %55 : vector<2x128xf32>
      %57 = arith.subf %15, %56 : vector<2x128xf32>
      %58 = math.exp %57 : vector<2x128xf32>
      %c127_i32_19 = arith.constant 127 : i32
      %59 = tpu.dynamic_rotate %58 by %c127_i32_19 dim 1 : vector<2x128xf32>, i32 -> vector<2x128xf32>
      %c1_i32_20 = arith.constant 1 : i32
      %60 = tpu.dynamic_rotate %58 by %c1_i32_20 dim 1 : vector<2x128xf32>, i32 -> vector<2x128xf32>
      %c1_i32_21 = arith.constant 1 : i32
      %61 = vector.broadcast %c1_i32_21 : i32 to vector<2x128xi32>
      %62 = arith.andi %16, %61 : vector<2x128xi32>
      %c0_i32_22 = arith.constant 0 : i32
      %63 = vector.broadcast %c0_i32_22 : i32 to vector<2x128xi32>
      %64 = arith.cmpi ne, %62, %63 : vector<2x128xi32>
      %65 = arith.select %64, %60, %59 : vector<2x128xi1>, vector<2x128xf32>
      %66 = arith.addf %58, %65 : vector<2x128xf32>
      %c126_i32_23 = arith.constant 126 : i32
      %67 = tpu.dynamic_rotate %66 by %c126_i32_23 dim 1 : vector<2x128xf32>, i32 -> vector<2x128xf32>
      %c2_i32_24 = arith.constant 2 : i32
      %68 = tpu.dynamic_rotate %66 by %c2_i32_24 dim 1 : vector<2x128xf32>, i32 -> vector<2x128xf32>
      %c2_i32_25 = arith.constant 2 : i32
      %69 = vector.broadcast %c2_i32_25 : i32 to vector<2x128xi32>
      %70 = arith.andi %16, %69 : vector<2x128xi32>
      %c0_i32_26 = arith.constant 0 : i32
      %71 = vector.broadcast %c0_i32_26 : i32 to vector<2x128xi32>
      %72 = arith.cmpi ne, %70, %71 : vector<2x128xi32>
      %73 = arith.select %72, %68, %67 : vector<2x128xi1>, vector<2x128xf32>
      %74 = arith.addf %66, %73 : vector<2x128xf32>
      %c124_i32_27 = arith.constant 124 : i32
      %75 = tpu.dynamic_rotate %74 by %c124_i32_27 dim 1 : vector<2x128xf32>, i32 -> vector<2x128xf32>
      %c4_i32_28 = arith.constant 4 : i32
      %76 = tpu.dynamic_rotate %74 by %c4_i32_28 dim 1 : vector<2x128xf32>, i32 -> vector<2x128xf32>
      %c4_i32_29 = arith.constant 4 : i32
      %77 = vector.broadcast %c4_i32_29 : i32 to vector<2x128xi32>
      %78 = arith.andi %16, %77 : vector<2x128xi32>
      %c0_i32_30 = arith.constant 0 : i32
      %79 = vector.broadcast %c0_i32_30 : i32 to vector<2x128xi32>
      %80 = arith.cmpi ne, %78, %79 : vector<2x128xi32>
      %81 = arith.select %80, %76, %75 : vector<2x128xi1>, vector<2x128xf32>
      %82 = arith.addf %74, %81 : vector<2x128xf32>
      %c120_i32_31 = arith.constant 120 : i32
      %83 = tpu.dynamic_rotate %82 by %c120_i32_31 dim 1 : vector<2x128xf32>, i32 -> vector<2x128xf32>
      %c8_i32_32 = arith.constant 8 : i32
      %84 = tpu.dynamic_rotate %82 by %c8_i32_32 dim 1 : vector<2x128xf32>, i32 -> vector<2x128xf32>
      %c8_i32_33 = arith.constant 8 : i32
      %85 = vector.broadcast %c8_i32_33 : i32 to vector<2x128xi32>
      %86 = arith.andi %16, %85 : vector<2x128xi32>
      %c0_i32_34 = arith.constant 0 : i32
      %87 = vector.broadcast %c0_i32_34 : i32 to vector<2x128xi32>
      %88 = arith.cmpi ne, %86, %87 : vector<2x128xi32>
      %89 = arith.select %88, %84, %83 : vector<2x128xi1>, vector<2x128xf32>
      %90 = arith.addf %82, %89 : vector<2x128xf32>
      %c112_i32_35 = arith.constant 112 : i32
      %91 = tpu.dynamic_rotate %90 by %c112_i32_35 dim 1 : vector<2x128xf32>, i32 -> vector<2x128xf32>
      %c16_i32_36 = arith.constant 16 : i32
      %92 = tpu.dynamic_rotate %90 by %c16_i32_36 dim 1 : vector<2x128xf32>, i32 -> vector<2x128xf32>
      %c16_i32_37 = arith.constant 16 : i32
      %93 = vector.broadcast %c16_i32_37 : i32 to vector<2x128xi32>
      %94 = arith.andi %16, %93 : vector<2x128xi32>
      %c0_i32_38 = arith.constant 0 : i32
      %95 = vector.broadcast %c0_i32_38 : i32 to vector<2x128xi32>
      %96 = arith.cmpi ne, %94, %95 : vector<2x128xi32>
      %97 = arith.select %96, %92, %91 : vector<2x128xi1>, vector<2x128xf32>
      %98 = arith.addf %90, %97 : vector<2x128xf32>
      %99 = tpu.reciprocal %98 : vector<2x128xf32> -> vector<2x128xf32>
      %100 = arith.mulf %58, %99 : vector<2x128xf32>
      %cst = arith.constant 0.000000e+00 : f32
      %101 = vector.broadcast %cst : f32 to vector<2x128xf32>
      %102 = arith.subf %101, %100 : vector<2x128xf32>
      %cst_39 = arith.constant 9.99999974E-6 : f32
      %103 = vector.broadcast %cst_39 : f32 to vector<2x128xf32>
      %104 = arith.addf %100, %103 : vector<2x128xf32>
      %105 = math.log %104 : vector<2x128xf32>
      %106 = arith.mulf %102, %105 : vector<2x128xf32>
      %cst_40 = arith.constant dense<0.000000e+00> : vector<2xf32>
      %107 = vector.multi_reduction <add>, %106, %cst_40 [1] : vector<2x128xf32> to vector<2xf32>
      %108 = vector.shape_cast %107 : vector<2xf32> to vector<2x1xf32>
      %109 = tpu.iota {dimensions = array<i32: 0>} : vector<2x1xi32>
      %110 = vector.broadcast %5 : i32 to vector<2x1xi32>
      %111 = arith.addi %109, %110 : vector<2x1xi32>
      %c2_i32_41 = arith.constant 2 : i32
      %112 = vector.broadcast %c2_i32_41 : i32 to vector<2x1xi32>
      %113 = arith.cmpi slt, %111, %112 : vector<2x1xi32>
      %cst_42 = arith.constant 0.000000e+00 : f32
      %114 = vector.broadcast %cst_42 : f32 to vector<2x1xf32>
      %115 = arith.select %113, %108, %114 : vector<2x1xi1>, vector<2x1xf32>
      %cst_43 = arith.constant 0.000000e+00 : f32
      %116 = vector.shape_cast %113 : vector<2x1xi1> to vector<2x1xi1>
      %117 = vector.broadcast %116 : vector<2x1xi1> to vector<2x128xi1>
      %118 = vector.broadcast %cst_43 : f32 to vector<2x128xf32>
      %119 = arith.select %117, %100, %118 : vector<2x128xi1>, vector<2x128xf32>
      %c0_44 = arith.constant 0 : index
      %c0_45 = arith.constant 0 : index
      %c0_46 = arith.constant 0 : index
      %120 = vector.load %arg3[%c0_44, %c0_45, %c0_46] : memref<1x1x1xf32, #tpu.memory_space<vmem>>, vector<1x1x1xf32>
      %cst_47 = arith.constant dense<0.000000e+00> : vector<1xf32>
      %121 = vector.multi_reduction <add>, %115, %cst_47 [0] : vector<2x1xf32> to vector<1xf32>
      %122 = vector.shape_cast %121 : vector<1xf32> to vector<1x1xf32>
      %123 = vector.shape_cast %122 : vector<1x1xf32> to vector<1x1x1xf32>
      %124 = arith.addf %120, %123 : vector<1x1x1xf32>
      %c0_48 = arith.constant 0 : index
      %c0_49 = arith.constant 0 : index
      %c0_50 = arith.constant 0 : index
      %125 = vector.load %arg3[%c0_48, %c0_49, %c0_50] : memref<1x1x1xf32, #tpu.memory_space<vmem>>, vector<1x1x1xf32>
      tpu.vector_store %arg3[%c0_48, %c0_49, %c0_50], %124 {strides = array<i32>} : memref<1x1x1xf32, #tpu.memory_space<vmem>>, vector<1x1x1xf32>,
      %c0_51 = arith.constant 0 : index
      %c0_52 = arith.constant 0 : index
      %c0_53 = arith.constant 0 : index
      %126 = vector.load %arg4[%c0_51, %c0_52, %c0_53] : memref<1x1x128xf32, #tpu.memory_space<vmem>>, vector<1x1x128xf32>
      %cst_54 = arith.constant dense<0.000000e+00> : vector<128xf32>
      %127 = vector.multi_reduction <add>, %119, %cst_54 [0] : vector<2x128xf32> to vector<128xf32>
      %128 = vector.shape_cast %127 : vector<128xf32> to vector<1x128xf32>
      %129 = vector.shape_cast %128 : vector<1x128xf32> to vector<1x1x128xf32>
      %130 = arith.addf %126, %129 : vector<1x1x128xf32>
      %c0_55 = arith.constant 0 : index
      %c0_56 = arith.constant 0 : index
      %c0_57 = arith.constant 0 : index
      %131 = vector.load %arg4[%c0_55, %c0_56, %c0_57] : memref<1x1x128xf32, #tpu.memory_space<vmem>>, vector<1x1x128xf32>
      tpu.vector_store %arg4[%c0_55, %c0_56, %c0_57], %130 {strides = array<i32>} : memref<1x1x128xf32, #tpu.memory_space<vmem>>, vector<1x1x128xf32>,
    } else {
    }
    return
  }
  func.func @transform_0(%arg0: i32, %arg1: i32) -> (i32, i32) {
    %c1_i32 = arith.constant 1 : i32
    %0 = arith.muli %arg0, %c1_i32 : i32
    %1 = arith.addi %0, %arg1 : i32
    %c0_i32 = arith.constant 0 : i32
    %2 = arith.minsi %1, %c0_i32 : i32
    %c0_i32_0 = arith.constant 0 : i32
    %c0_i32_1 = arith.constant 0 : i32
    return %2, %c0_i32_0 : i32, i32
  }
  func.func @transform_1(%arg0: i32, %arg1: i32) -> (i32, i32, i32) {
    %c0_i32 = arith.constant 0 : i32
    %c0_i32_0 = arith.constant 0 : i32
    %c0_i32_1 = arith.constant 0 : i32
    return %arg0, %c0_i32, %c0_i32_0 : i32, i32, i32
  }
  func.func @transform_2(%arg0: i32, %arg1: i32) -> (i32, i32, i32) {
    %c0_i32 = arith.constant 0 : i32
    %c0_i32_0 = arith.constant 0 : i32
    %c0_i32_1 = arith.constant 0 : i32
    return %arg0, %c0_i32, %c0_i32_0 : i32, i32, i32
  }
}

</mosaic_0001>

<bundles_post_ra>
// kernel: tpu_custom_call.1
= control target key start
LH: loop header
LB: loop body
LE: loop exit
PB: predicated region body
PF: predicated region fallthrough
CT: control target
= control target key end

     0   :  { %8 = vsyncpa [#allocation3], 0  ;;  %s541_s0 = inlined_call_operand.hbm [shape: f32[2,128], index: 0, kind: input, shape index: {}]   ;;  %s542_s1 = inlined_call_operand.hbm [shape: f32[1,1,1], index: 1, kind: output, shape index: {0}]   ;;  %s543_s2 = inlined_call_operand.hbm [shape: f32[1,1,128], index: 2, kind: output, shape index: {1}]  }
   0x1   :  { %9 = vsyncpa [#allocation4], 0 }
   0x2   :  { %10 = vsyncpa [#allocation7], 0  ;;  %s21_s11 = sshll.u32 %s541_s0, 4  ;;  %s438_s12 = smov [#allocation2]   ;;  %s22_s11 = int_to_ptr.hbm [resolvable:$true] %s21_s11 }
   0x3   :  { %s23_s13 = sshll.u32 %s438_s12, 4  ;;  %s24_s13 = int_to_ptr.vmem [resolvable:$true] %s23_s13 }
   0x4   :  { %26 = dma.hbm_to_vmem [thread:$0]  %s22_s11, 32, %s24_s13, [#allocation3]  }
   0x5   :  { %432 = dma.done.wait [#allocation3], 32  }
   0x6   :  { %433 = vsyncadd [#allocation3], 4294967264  ;;  %vm38_vm0 = vcmask 0   ;;  %v439_v0 = vmov 0.0   ;;  %v48_v1 = vld [vmem:[#allocation2] sm:$0x3]  ;;  %v49_v2 = vlaneseq }
   0x7   :  { %39 = vst.msk [vmem:[#allocation5] sm:$0x1] %vm38_vm0, %v439_v0  ;;  %s440_s14 = smov 127   ;;  %s441_s15 = smov 1   ;;  %vm144_vm10 = vcmask 1041408  }
   0x8   :  { %40 = vst [vmem:[#allocation6] sm:$0x1] %v439_v0  ;;  %51 = vrot.lane.b32.xlu0 %v48_v1, %s440_s14  ;;  %v50_v3 = vand.u32 127, %v49_v2  ;;  %s442_s0 = smov 126   ;;  %s443_s16 = smov 2  }
   0x9   :  { %s444_s17 = smov 124   ;;  %s445_s18 = smov 4  }
   0xa   :  { %v55_v5 = vand.u32 1, %v50_v3  ;;  %v63_v11 = vand.u32 2, %v50_v3  ;;  %v71_v17 = vand.u32 4, %v50_v3  ;;  %s446_s19 = smov 8   ;;  %s447_s20 = smov 120   ;;  %v79_v22 = vand.u32 8, %v50_v3 }
   0xb   :  { %s448_s21 = smov 16   ;;  %s449_s22 = smov 112   ;;  %v87_v28 = vand.u32 16, %v50_v3 }
   0xc   :  { %vm473_vm1 = vcmp.ne.s32.totalorder %v55_v5, 0  ;;  %vm481_vm2 = vcmp.ne.s32.totalorder %v63_v11, 0  ;;  %vm489_vm3 = vcmp.ne.s32.totalorder %v71_v17, 0  ;;  %vm497_vm4 = vcmp.ne.s32.totalorder %v79_v22, 0  ;;  %s450_s23 = smov [#allocation6]   ;;  %s323_s27 = sshll.u32 %s543_s2, 4  ;;  %s324_s27 = int_to_ptr.hbm [resolvable:$true] %s323_s27 }
   0xd   :  { %vm505_vm5 = vcmp.ne.s32.totalorder %v87_v28, 0  ;;  %s321_s24 = sshll.u32 %s450_s23, 4  ;;  %s451_s28 = smov [#allocation5]   ;;  %s322_s24 = int_to_ptr.vmem [resolvable:$true] %s321_s24 }
   0xe   :  { %s310_s29 = sshll.u32 %s451_s28, 4  ;;  %s312_s4 = sshll.u32 %s542_s1, 4  ;;  %s311_s29 = int_to_ptr.vmem [resolvable:$true] %s310_s29  ;;  %s313_s4 = int_to_ptr.hbm [resolvable:$true] %s312_s4 }
  0x10   :  { %53 = vrot.lane.b32.xlu0 %v48_v1, %s441_s15 }
  0x7a   :  { %v52_v4 = vpop.permute.xlu0 %51 }
  0x82   :  { %v54_v7 = vpop.permute.xlu0 %53 }
  0x83   :  { %v57_v8 = vsel %vm473_vm1, %v54_v7, %v52_v4 }
  0x84   :  { %v58_v9 = vmax.f32 %v48_v1, %v57_v8 }
  0x86   :  { %59 = vrot.lane.b32.xlu1 %v58_v9, %s442_s0 }
  0x8e   :  { %61 = vrot.lane.b32.xlu1 %v58_v9, %s443_s16 }
  0xf8   :  { %v60_v10 = vpop.permute.xlu1 %59 }
 0x100   :  { %v62_v13 = vpop.permute.xlu1 %61 }
 0x101   :  { %v65_v14 = vsel %vm481_vm2, %v62_v13, %v60_v10 }
 0x102   :  { %v66_v15 = vmax.f32 %v58_v9, %v65_v14  ;;  %v159_v14 = vld [vmem:[#allocation6] sm:$0x1] }
 0x104   :  { %67 = vrot.lane.b32.xlu2 %v66_v15, %s444_s17 }
 0x10c   :  { %69 = vrot.lane.b32.xlu2 %v66_v15, %s445_s18 }
 0x15e   :  { %v68_v16 = vpop.permute.xlu2 %67 }
 0x166   :  { %v70_v19 = vpop.permute.xlu2 %69 }
 0x167   :  { %v73_v20 = vsel %vm489_vm3, %v70_v19, %v68_v16 }
 0x168   :  { %v74_v21 = vmax.f32 %v66_v15, %v73_v20 }
 0x16a   :  { %77 = vrot.lane.b32.xlu1 %v74_v21, %s446_s19  ;;  %75 = vrot.lane.b32.xlu0 %v74_v21, %s447_s20 }
 0x1dc   :  { %v78_v24 = vpop.permute.xlu1 %77  ;;  %v76_v25 = vpop.permute.xlu0 %75 }
 0x1dd   :  { %v81_v26 = vsel %vm497_vm4, %v78_v24, %v76_v25 }
 0x1de   :  { %v82_v27 = vmax.f32 %v74_v21, %v81_v26  ;;  %v148_v26 = vld [vmem:[#allocation5] sm:$0x1] }
 0x1e0   :  { %85 = vrot.lane.b32.xlu0 %v82_v27, %s448_s21  ;;  %83 = vrot.lane.b32.xlu2 %v82_v27, %s449_s22 }
 0x23a   :  { %v84_v30 = vpop.permute.xlu2 %83 }
 0x252   :  { %v86_v31 = vpop.permute.xlu0 %85 }
 0x253   :  { %v89_v32 = vsel %vm505_vm5, %v86_v31, %v84_v30 }
 0x254   :  { %v90_v33 = vmax.f32 %v82_v27, %v89_v32 }
 0x256   :  { %v91_v34 = vsub.f32 %v48_v1, %v90_v33 }
 0x258   :  { %v92_v35 = vmul.f32 1.442695, %v91_v34 }
 0x25a   :  { %354 = vpow2.f32 %v92_v35 }
 0x260   :  { %v355_v36 = vpop.eup %354 }
 0x261   :  { %96 = vrot.lane.b32.xlu2 %v355_v36, %s441_s15  ;;  %94 = vrot.lane.b32.xlu1 %v355_v36, %s440_s14 }
 0x2bb   :  { %v97_v37 = vpop.permute.xlu2 %96 }
 0x2d3   :  { %v95_v38 = vpop.permute.xlu1 %94 }
 0x2d4   :  { %v98_v39 = vsel %vm473_vm1, %v97_v37, %v95_v38 }
 0x2d5   :  { %v99_v40 = vadd.f32 %v355_v36, %v98_v39 }
 0x2d7   :  { %102 = vrot.lane.b32.xlu1 %v99_v40, %s443_s16  ;;  %100 = vrot.lane.b32.xlu0 %v99_v40, %s442_s0 }
 0x349   :  { %v103_v41 = vpop.permute.xlu1 %102  ;;  %v101_v42 = vpop.permute.xlu0 %100 }
 0x34a   :  { %v104_v43 = vsel %vm481_vm2, %v103_v41, %v101_v42 }
 0x34b   :  { %v105_v44 = vadd.f32 %v104_v43, %v99_v40 }
 0x34d   :  { %108 = vrot.lane.b32.xlu0 %v105_v44, %s445_s18  ;;  %106 = vrot.lane.b32.xlu2 %v105_v44, %s444_s17 }
 0x3a7   :  { %v107_v45 = vpop.permute.xlu2 %106 }
 0x3bf   :  { %v109_v46 = vpop.permute.xlu0 %108 }
 0x3c0   :  { %v110_v47 = vsel %vm489_vm3, %v109_v46, %v107_v45 }
 0x3c1   :  { %v111_v48 = vadd.f32 %v110_v47, %v105_v44 }
 0x3c3   :  { %114 = vrot.lane.b32.xlu2 %v111_v48, %s446_s19  ;;  %112 = vrot.lane.b32.xlu1 %v111_v48, %s447_s20 }
 0x41d   :  { %v115_v49 = vpop.permute.xlu2 %114 }
 0x435   :  { %v113_v50 = vpop.permute.xlu1 %112 }
 0x436   :  { %v116_v51 = vsel %vm497_vm4, %v115_v49, %v113_v50 }
 0x437   :  { %v117_v52 = vadd.f32 %v116_v51, %v111_v48 }
 0x439   :  { %120 = vrot.lane.b32.xlu1 %v117_v52, %s448_s21  ;;  %118 = vrot.lane.b32.xlu0 %v117_v52, %s449_s22 }
 0x4ab   :  { %v121_v53 = vpop.permute.xlu1 %120  ;;  %v119_v54 = vpop.permute.xlu0 %118 }
 0x4ac   :  { %v122_v55 = vsel %vm505_vm5, %v121_v53, %v119_v54 }
 0x4ad   :  { %v123_v56 = vadd.f32 %v122_v55, %v117_v52 }
 0x4af   :  { %356 = vrcp.f32 %v123_v56  ;;  %v135_v60 = vand.u32 2147483648, %v123_v56  ;;  %v133_v62 = vand.u32 2147483647, %v123_v56  ;;  %vm129_vm7 = vweird.f32 %v123_v56 }
 0x4b1   :  { %v136_v0 = vor.u32 1.1754944e-38, %v135_v60  ;;  %vm134_vm9 = vcmp.eq.f32.partialorder %v133_v62, 8.507059e+37 }
 0x4b5   :  { %v357_v57 = vpop.eup %356 }
 0x4b6   :  { %v125_v58 = vmul.f32 %v357_v57, %v123_v56  ;;  %vm130_vm6 = vweird.f32 %v357_v57 }
 0x4b7   :  { %vm131_vm8 = vmor %vm129_vm7, %vm130_vm6 }
 0x4b8   :  { %v126_v59 = vsub.f32 1.0, %v125_v58 }
 0x4ba   :  { %v127_v61 = vmul.f32 %v357_v57, %v126_v59 }
 0x4bc   :  { %v128_v63 = vadd.f32 %v357_v57, %v127_v61 }
 0x4be   :  { %v132_v1 = vsel %vm131_vm8, %v357_v57, %v128_v63 }
 0x4bf   :  { %v137_v2 = vsel %vm134_vm9, %v136_v0, %v132_v1 }
 0x4c0   :  { %v138_v3 = vmul.f32 %v355_v36, %v137_v2 }
 0x4c2   :  { %v140_v4 = vadd.f32 1e-05, %v138_v3  ;;  %v160_v5 = vsel %vm144_vm10, %v138_v3, 0.0  ;;  %v139_v11 = vsub.f32 0.0, %v138_v3 }
 0x4c3   :  { %v161_v6 = vrot.slane %v160_v5, 4 }
 0x4c4   :  { %358 = vlog2.f32 %v140_v4 }
 0x4c5   :  { %v162_v7 = vadd.f32 %v161_v6, %v160_v5 }
 0x4c7   :  { %v163_v8 = vrot.slane %v162_v7, 2 }
 0x4c9   :  { %v164_v9 = vadd.f32 %v163_v8, %v162_v7 }
 0x4ca   :  { %v359_v10 = vpop.eup %358 }
 0x4cb   :  { %v142_v12 = vmul.f32 0.6931472, %v359_v10  ;;  %v165_v13 = vrot.slane %v164_v9, 1 }
 0x4cd   :  { %v143_v15 = vmul.f32 %v142_v12, %v139_v11  ;;  %v166_v16 = vadd.f32 %v165_v13, %v164_v9 }
 0x4cf   :  { %v145_v17 = vsel %vm144_vm10, %v143_v15, 0.0  ;;  %v167_v18 = vadd.f32 %v166_v16, %v159_v14 }
 0x4d0   :  { %146 = vadd.xlane.f32.xlu2 %v145_v17 }
 0x4d1   :  { %168 = vst [vmem:[#allocation6] sm:$0x1] %v167_v18 }
 0x4d2   :  { %326 = dma.vmem_to_hbm [thread:$0]  %s322_s24, 16, %s324_s27, [#allocation7]  }
 0x543   :  { %v147_v19 = vpop.xlane.xlu2 %146 }
 0x544   :  { %v149_v20 = vsel %vm144_vm10, %v147_v19, 0.0 }
 0x545   :  { %v150_v21 = vrot.slane %v149_v20, 4 }
 0x547   :  { %v151_v22 = vadd.f32 %v150_v21, %v149_v20 }
 0x549   :  { %v152_v23 = vrot.slane %v151_v22, 2 }
 0x54b   :  { %v153_v24 = vadd.f32 %v152_v23, %v151_v22 }
 0x54d   :  { %v154_v25 = vrot.slane %v153_v24, 1 }
 0x54f   :  { %v155_v27 = vadd.f32 %v154_v25, %v153_v24 }
 0x551   :  { %v156_v28 = vadd.f32 %v155_v27, %v148_v26 }
 0x553   :  { %158 = vst.msk [vmem:[#allocation5] sm:$0x1] %vm38_vm0, %v156_v28 }
 0x554   :  { %315 = dma.vmem_to_hbm [thread:$0]  %s311_s29, 16, %s313_s4, [#allocation4]  }
 0x555   :  { %434 = dma.done.wait [#allocation4], 16  }
 0x556   :  { %435 = vsyncadd [#allocation4], 4294967280 }
 0x557   :  { %436 = dma.done.wait [#allocation7], 16  }
 0x558   :  { %437 = vsyncadd [#allocation7], 4294967280 }
 0x559   :  { %335 = vsyncpa [#allocation3], 1 }
 0x55a   :  { %336 = vsyncpa [#allocation4], 1 }
 0x55b   :  { %337 = vsyncpa [#allocation7], 1 }

</bundles_post_ra>
